<compile_context>
chip_gen: v5e
topology: v5e:2x2
jax: 0.10.0
libtpu: 0.0.40
codegen_flags: <defaults>
</compile_context>

<pallas_src>
import functools

import jax
import jax.numpy as jnp
from jax.experimental import pallas as pl
from jax.experimental.pallas import tpu as pltpu

_LANES = 128
_SUBLANES = 8
_TARGET_ROWS = 2048           # 2048 x 128 elems per block (~1 MiB f32 / 0.5 MiB bf16)
_MIN_PALLAS_ELEMENTS = 65536  # below this, plain jnp wins


def _round_up(x, m):
    return ((x + m - 1) // m) * m


def _triplet_loss_kernel(dxy_ref, dxz_ref, out_ref, *, margin):
    @pl.when(pl.program_id(0) == 0)
    def _():
        out_ref[...] = jnp.zeros_like(out_ref)

    # In-kernel upcast: bf16 stays bf16 in HBM, compute/accumulate in f32.
    dxy = dxy_ref[...].astype(jnp.float32)
    dxz = dxz_ref[...].astype(jnp.float32)
    losses = jnp.maximum(dxy - dxz + margin, 0.0)

    # (tile_rows,128) -> (tile_rows//8, 8, 128) is a layout-trivial regroup of
    # whole vregs; the axis-0 sum is pure VPU adds (no XLU) into one vreg.
    tr = losses.shape[0]
    partial = jnp.sum(losses.reshape(tr // _SUBLANES, _SUBLANES, _LANES), axis=0)
    out_ref[...] += partial


def _reference_loss(d_xy, d_xz, margin):
    return jnp.mean(
        jnp.maximum(d_xy.astype(jnp.float32) - d_xz.astype(jnp.float32) + margin,
                    0.0))


def triplet_metric_loss(d_xy, d_xz, margin, size_average=True,
                        *, min_pallas_elements=_MIN_PALLAS_ELEMENTS):
    """Pallas TPU implementation of TripletMetricLoss.forward.

    Like the reference PyTorch module, `size_average` is ignored and the mean
    of relu(d_xy - d_xz + margin) is always returned (as float32).
    """
    assert d_xy.shape == d_xz.shape, (d_xy.shape, d_xz.shape)
    assert d_xy.dtype == d_xz.dtype, (d_xy.dtype, d_xz.dtype)

    total = int(d_xy.size)
    margin = float(margin)

    # Tiny tensors: kernel launch / pipeline warm-up dominates -> plain jnp.
    if total < min_pallas_elements:
        return _reference_loss(d_xy, d_xz, margin)

    itemsize = jnp.dtype(d_xy.dtype).itemsize

    # ---- blocking: balanced blocks, <8 rows of sentinel padding per block ---
    rows_needed = pl.cdiv(total, _LANES)
    rows = _round_up(rows_needed, _SUBLANES)
    if rows <= _TARGET_ROWS:
        num_blocks = 1
        tile_rows = rows
    else:
        num_blocks = pl.cdiv(rows, _TARGET_ROWS)
        tile_rows = _round_up(pl.cdiv(rows, num_blocks), _SUBLANES)
    padded_rows = num_blocks * tile_rows

    # ---- sentinel padding: padded relu terms are exactly 0, no in-kernel mask
    dxy_flat = d_xy.reshape(-1)
    dxz_flat = d_xz.reshape(-1)
    pad = padded_rows * _LANES - total
    if pad:
        sentinel = -(abs(margin) + 1.0)   # sentinel - 0 + margin <= -1  =>  relu == 0
        dxy_flat = jnp.pad(dxy_flat, (0, pad), constant_values=sentinel)
        dxz_flat = jnp.pad(dxz_flat, (0, pad))
    dxy2 = dxy_flat.reshape(padded_rows, _LANES)
    dxz2 = dxz_flat.reshape(padded_rows, _LANES)

    kernel = functools.partial(_triplet_loss_kernel, margin=margin)

    partials = pl.pallas_call(
        kernel,
        out_shape=jax.ShapeDtypeStruct((_SUBLANES, _LANES), jnp.float32),
        grid=(num_blocks,),
        in_specs=[
            pl.BlockSpec((tile_rows, _LANES), lambda j: (j, 0)),
            pl.BlockSpec((tile_rows, _LANES), lambda j: (j, 0)),
        ],
        out_specs=pl.BlockSpec((_SUBLANES, _LANES), lambda j: (0, 0)),
        compiler_params=pltpu.CompilerParams(
            dimension_semantics=("arbitrary",),
        ),
        cost_estimate=pl.CostEstimate(
            flops=3 * total,
            transcendentals=0,
            bytes_accessed=2 * padded_rows * _LANES * itemsize
            + _SUBLANES * _LANES * 4,
        ),
    )(dxy2, dxz2)

    # Tiny final cross-lane reduce + divide by the true element count.
    return jnp.sum(partials) / total


if __name__ == "__main__":
    key = jax.random.PRNGKey(0)
    k1, k2, k3, k4, k5, k6 = jax.random.split(key, 6)
    margin = 0.2

    # 1) Small lane-aligned f32 case, forced through the Pallas path.
    shape = (2, 4, 16, 16)   # 2048 elements
    d_xy = jax.random.uniform(k1, shape, dtype=jnp.float32)
    d_xz = jax.random.uniform(k2, shape, dtype=jnp.float32)
    loss = triplet_metric_loss(d_xy, d_xz, margin, min_pallas_elements=0)
    jax.block_until_ready(loss)
    ref = jnp.mean(jnp.maximum(d_xy - d_xz + margin, 0.0))
    assert jnp.allclose(loss, ref, atol=1e-6, rtol=1e-6), (loss, ref)

    # 2) Non-aligned size (exercises the sentinel-padding path), Pallas path.
    shape2 = (3, 5, 7)       # 105 elements
    d_xy2 = jax.random.uniform(k3, shape2, dtype=jnp.float32)
    d_xz2 = jax.random.uniform(k4, shape2, dtype=jnp.float32)
    loss2 = triplet_metric_loss(d_xy2, d_xz2, margin, min_pallas_elements=0)
    jax.block_until_ready(loss2)
    ref2 = jnp.mean(jnp.maximum(d_xy2 - d_xz2 + margin, 0.0))
    assert jnp.allclose(loss2, ref2, atol=1e-6, rtol=1e-6), (loss2, ref2)

    # 3) bf16 inputs stay bf16 into the kernel (upcast happens in-kernel).
    d_xy3 = d_xy.astype(jnp.bfloat16)
    d_xz3 = d_xz.astype(jnp.bfloat16)
    loss3 = triplet_metric_loss(d_xy3, d_xz3, margin, min_pallas_elements=0)
    jax.block_until_ready(loss3)
    ref3 = jnp.mean(jnp.maximum(
        d_xy3.astype(jnp.float32) - d_xz3.astype(jnp.float32) + margin, 0.0))
    assert jnp.allclose(loss3, ref3, atol=1e-5, rtol=1e-5), (loss3, ref3)

    # 4) Multi-block, unevenly-sized input with default threshold
    #    (exercises the 1-D reduction grid + sentinel tail across blocks).
    shape4 = (2, 3, 173, 257)   # 266,766 elements -> 2 blocks
    d_xy4 = jax.random.uniform(k5, shape4, dtype=jnp.float32)
    d_xz4 = jax.random.uniform(k6, shape4, dtype=jnp.float32)
    loss4 = triplet_metric_loss(d_xy4, d_xz4, margin)
    jax.block_until_ready(loss4)
    ref4 = jnp.mean(jnp.maximum(d_xy4 - d_xz4 + margin, 0.0))
    assert jnp.allclose(loss4, ref4, atol=1e-6, rtol=1e-6), (loss4, ref4)

    # 5) Small input with default threshold exercises the jnp fallback.
    loss5 = triplet_metric_loss(d_xy, d_xz, margin)
    jax.block_until_ready(loss5)
    assert jnp.allclose(loss5, ref, atol=1e-6, rtol=1e-6), (loss5, ref)

    print("KERNEL_OK")
</pallas_src>

<mosaic_0001>
module attributes {stable_mosaic.version = 11 : i64} {
  func.func @_triplet_loss_kernel(%arg0: i32, %arg1: memref<16x128xf32, #tpu.memory_space<vmem>>, %arg2: memref<16x128xf32, #tpu.memory_space<vmem>>, %arg3: memref<8x128xf32, #tpu.memory_space<vmem>>) attributes {dimension_semantics = [#tpu.dimension_semantics<arbitrary>], iteration_bounds = array<i64: 1>, scalar_prefetch = 0 : i64, scratch_operands = 0 : i64, tpu.core_type = #tpu.core_type<tc>, window_params = [{transform_indices = @transform_0, window_bounds = array<i64: 16, 128>}, {transform_indices = @transform_1, window_bounds = array<i64: 16, 128>}, {pipeline_mode = #tpu.pipeline_mode<synchronous>, transform_indices = @transform_2, window_bounds = array<i64: 8, 128>}]} {
    %c0_i32 = arith.constant 0 : i32
    %0 = arith.cmpi eq, %arg0, %c0_i32 : i32
    %1 = arith.extui %0 : i1 to i32
    %c0_i32_0 = arith.constant 0 : i32
    %2 = arith.cmpi ne, %1, %c0_i32_0 : i32
    scf.if %2 {
      %cst_10 = arith.constant 0.000000e+00 : f32
      %15 = vector.broadcast %cst_10 : f32 to vector<8x128xf32>
      %c0_11 = arith.constant 0 : index
      %c0_12 = arith.constant 0 : index
      %16 = vector.load %arg3[%c0_11, %c0_12] : memref<8x128xf32, #tpu.memory_space<vmem>>, vector<8x128xf32>
      tpu.vector_store %arg3[%c0_11, %c0_12], %15 {strides = array<i32>} : memref<8x128xf32, #tpu.memory_space<vmem>>, vector<8x128xf32>,
    } else {
    }
    %c0 = arith.constant 0 : index
    %c0_1 = arith.constant 0 : index
    %3 = vector.load %arg1[%c0, %c0_1] : memref<16x128xf32, #tpu.memory_space<vmem>>, vector<16x128xf32>
    %c0_2 = arith.constant 0 : index
    %c0_3 = arith.constant 0 : index
    %4 = vector.load %arg2[%c0_2, %c0_3] : memref<16x128xf32, #tpu.memory_space<vmem>>, vector<16x128xf32>
    %5 = arith.subf %3, %4 : vector<16x128xf32>
    %cst = arith.constant 2.000000e-01 : f32
    %6 = vector.broadcast %cst : f32 to vector<16x128xf32>
    %7 = arith.addf %5, %6 : vector<16x128xf32>
    %cst_4 = arith.constant 0.000000e+00 : f32
    %8 = vector.broadcast %cst_4 : f32 to vector<16x128xf32>
    %9 = arith.maximumf %7, %8 : vector<16x128xf32>
    %10 = vector.shape_cast %9 : vector<16x128xf32> to vector<2x8x128xf32>
    %cst_5 = arith.constant dense<0.000000e+00> : vector<8x128xf32>
    %11 = vector.multi_reduction <add>, %10, %cst_5 [0] : vector<2x8x128xf32> to vector<8x128xf32>
    %c0_6 = arith.constant 0 : index
    %c0_7 = arith.constant 0 : index
    %12 = vector.load %arg3[%c0_6, %c0_7] : memref<8x128xf32, #tpu.memory_space<vmem>>, vector<8x128xf32>
    %13 = arith.addf %12, %11 : vector<8x128xf32>
    %c0_8 = arith.constant 0 : index
    %c0_9 = arith.constant 0 : index
    %14 = vector.load %arg3[%c0_8, %c0_9] : memref<8x128xf32, #tpu.memory_space<vmem>>, vector<8x128xf32>
    tpu.vector_store %arg3[%c0_8, %c0_9], %13 {strides = array<i32>} : memref<8x128xf32, #tpu.memory_space<vmem>>, vector<8x128xf32>,
    return
  }
  func.func @transform_0(%arg0: i32) -> (i32, i32) {
    %c0_i32 = arith.constant 0 : i32
    %c0_i32_0 = arith.constant 0 : i32
    return %arg0, %c0_i32 : i32, i32
  }
  func.func @transform_1(%arg0: i32) -> (i32, i32) {
    %c0_i32 = arith.constant 0 : i32
    %c0_i32_0 = arith.constant 0 : i32
    return %arg0, %c0_i32 : i32, i32
  }
  func.func @transform_2(%arg0: i32) -> (i32, i32) {
    %c0_i32 = arith.constant 0 : i32
    %c0_i32_0 = arith.constant 0 : i32
    %c0_i32_1 = arith.constant 0 : i32
    return %c0_i32, %c0_i32_0 : i32, i32
  }
}

</mosaic_0001>

<bundles_post_ra>
// kernel: tpu_custom_call.1
= control target key start
LH: loop header
LB: loop body
LE: loop exit
PB: predicated region body
PF: predicated region fallthrough
CT: control target
= control target key end

     0   :  { %7 = vsyncpa [#allocation3], 0  ;;  %s194_s0 = inlined_call_operand.hbm [shape: f32[16,128], index: 0, kind: input, shape index: {}]   ;;  %s195_s1 = inlined_call_operand.hbm [shape: f32[16,128], index: 1, kind: input, shape index: {}]   ;;  %s196_s2 = inlined_call_operand.hbm [shape: f32[8,128], index: 2, kind: output, shape index: {}]  }
   0x1   :  { %8 = vsyncpa [#allocation6], 0 }
   0x2   :  { %9 = vsyncpa [#allocation4], 0  ;;  %s14_s11 = sshll.u32 %s194_s0, 4  ;;  %s165_s12 = smov [#allocation2]   ;;  %s15_s11 = int_to_ptr.hbm [resolvable:$true] %s14_s11 }
   0x3   :  { %s16_s13 = sshll.u32 %s165_s12, 4  ;;  %s27_s16 = sshll.u32 %s195_s1, 4  ;;  %s17_s13 = int_to_ptr.vmem [resolvable:$true] %s16_s13  ;;  %s28_s16 = int_to_ptr.hbm [resolvable:$true] %s27_s16 }
   0x4   :  { %s166_s17 = smov 128   ;;  %s167_s18 = smov 8  }
   0x5   :  { %22 = dma.hbm_to_vmem [thread:$0]  %s15_s11, 256, %s17_s13, [#allocation3], %s166_s17, %s166_s17, %s167_s18  }
   0x6   :  { %s168_s19 = smov [#allocation5]  }
   0x7   :  { %s29_s20 = sshll.u32 %s168_s19, 4  ;;  %s30_s20 = int_to_ptr.vmem [resolvable:$true] %s29_s20 }
   0x8   :  { %35 = dma.hbm_to_vmem [thread:$0]  %s28_s16, 256, %s30_s20, [#allocation6], %s166_s17, %s166_s17, %s167_s18  }
   0x9   :  { %159 = dma.done.wait [#allocation3], 256  }
   0xa   :  { %160 = vsyncadd [#allocation3], 4294967040 }
   0xb   :  { %161 = dma.done.wait [#allocation6], 256  }
   0xc   :  { %162 = vsyncadd [#allocation6], 4294967040  ;;  %v49_v0 = vld [vmem:[#allocation2] sm:$0xff]  ;;  %v50_v1 = vld [vmem:[#allocation2 + $0x8] sm:$0xff]  ;;  %s169_s0 = smov [#allocation7]   ;;  %s70_s23 = sshll.u32 %s196_s2, 4  ;;  %s71_s23 = int_to_ptr.hbm [resolvable:$true] %s70_s23 }
   0xd   :  { %v51_v2 = vld [vmem:[#allocation5] sm:$0xff]  ;;  %v52_v3 = vld [vmem:[#allocation5 + $0x8] sm:$0xff]  ;;  %s68_s1 = sshll.u32 %s169_s0, 4  ;;  %s69_s1 = int_to_ptr.vmem [resolvable:$true] %s68_s1 }
   0xe   :  { %v53_v4 = vsub.f32 %v49_v0, %v51_v2  ;;  %v54_v5 = vsub.f32 %v50_v1, %v52_v3 }
  0x10   :  { %v55_v6 = vadd.f32 0.2, %v53_v4  ;;  %v56_v7 = vadd.f32 0.2, %v54_v5 }
  0x12   :  { %v57_v8 = vmax.f32 %v55_v6, 0.0  ;;  %v58_v9 = vmax.f32 %v56_v7, 0.0 }
  0x14   :  { %v59_v10 = vadd.f32 %v58_v9, %v57_v8 }
  0x16   :  { %62 = vst [vmem:[#allocation7] sm:$0xff] %v59_v10 }
  0x17   :  { %73 = dma.vmem_to_hbm [thread:$0]  %s69_s1, 128, %s71_s23, [#allocation4]  }
  0x18   :  { %163 = dma.done.wait [#allocation4], 128  }
  0x19   :  { %164 = vsyncadd [#allocation4], 4294967168 }
  0x1a   :  { %78 = vsyncpa [#allocation3], 1 }
  0x1b   :  { %79 = vsyncpa [#allocation6], 1 }
  0x1c   :  { %80 = vsyncpa [#allocation4], 1 }

</bundles_post_ra>
